<compile_context>
chip_gen: v5e
topology: v5e:2x2
jax: 0.10.0
libtpu: 0.0.40
codegen_flags: <defaults>
</compile_context>

<pallas_src>
import functools

import numpy as np

import jax
import jax.numpy as jnp
from jax.experimental import pallas as pl
from jax.experimental.pallas import tpu as pltpu


def _peg_kernel(x_ref, w_ref, b_ref, o_ref, *, H, W, start, k):
    """Depthwise k x k conv + bias + residual over tokens [start, start + H*W).

    x_ref, o_ref: (BT, N, CT) token blocks (CT = lane-dense channel tile)
    w_ref:        (k*k, CT) f32 depthwise taps, row-major over (dy, dx)
    b_ref:        (1, CT) bias
    Tokens outside the feature window are passed through unchanged.
    """
    BT, N, CT = x_ref.shape
    T = H * W
    pad = k // 2

    # bf16 models keep the tap multiplies in bf16 (packed VALU on v6e/v7x); the
    # accumulator stays f32.  f32 models (and v5e) compute fully in f32.
    compute_dtype = (jnp.bfloat16
                     if jnp.dtype(x_ref.dtype) == jnp.dtype(jnp.bfloat16)
                     else jnp.float32)

    # Pass-through of non-feature tokens (cls head / any tail tokens).
    if start > 0:
        o_ref[:, :start, :] = x_ref[:, :start, :]
    if start + T < N:
        o_ref[:, start + T:, :] = x_ref[:, start + T:, :]

    # Residual + bias initialize the accumulator (no center-tap folding).
    bias = b_ref[...].astype(jnp.float32)[:, None, :]                 # (1, 1, CT)
    acc = x_ref[:, start:start + T, :].astype(jnp.float32) + bias     # (BT, T, CT)

    # Column index (w = t mod W) of every feature token, for W-boundary masks.
    col = jax.lax.broadcasted_iota(jnp.int32, (1, T, 1), 1) % W

    for dy in range(-pad, pad + 1):
        # Output rows h whose source row h+dy stays inside [0, H) -> contiguous band.
        t0 = max(0, -dy) * W
        t1 = (H - max(0, dy)) * W
        if t1 <= t0:
            continue
        for dx in range(-pad, pad + 1):
            # Source token window inside the x block for this tap.  The <=pad tokens
            # that would fall outside the block are always masked columns, so the
            # band is simply trimmed by lo/hi instead of reading out of bounds.
            a = start + t0 + dy * W + dx
            b = start + t1 + dy * W + dx
            lo = max(0, -a)
            hi = max(0, b - N)
            o0, o1 = t0 + lo, t1 - hi
            if o1 <= o0:
                continue

            tap = (dy + pad) * k + (dx + pad)
            wtap = w_ref[tap:tap + 1, :].astype(compute_dtype)        # (1, CT)
            src = x_ref[:, a + lo:b - hi, :].astype(compute_dtype)    # (BT, o1-o0, CT)
            contrib = src * wtap[:, None, :]
            if dx != 0:
                band_col = col[:, o0:o1, :]
                valid = (band_col >= -dx) & (band_col <= W - 1 - dx)
                contrib = jnp.where(valid, contrib, 0)
            contrib = contrib.astype(jnp.float32)

            # Extend the band back to the full T tokens with zeros (the skipped
            # tokens are exactly the conv's zero-padding positions) and accumulate.
            if o0 > 0 or o1 < T:
                parts = []
                if o0 > 0:
                    parts.append(jnp.zeros((BT, o0, CT), jnp.float32))
                parts.append(contrib)
                if o1 < T:
                    parts.append(jnp.zeros((BT, T - o1, CT), jnp.float32))
                contrib = jnp.concatenate(parts, axis=1)
            acc = acc + contrib

    o_ref[:, start:start + T, :] = acc.astype(o_ref.dtype)


def _round_up(v, m):
    return ((v + m - 1) // m) * m


def peg_tokens(x, weight_kkc, bias_c, *, H, W, start, k=3):
    """Apply the PEG depthwise conv + residual to tokens [start, start + H*W) of x.

    x: (B, N, C) tokens (tokens outside the window pass through unchanged).
    weight_kkc: (k, k, C) channels-last depthwise taps; bias_c: (C,).
    """
    B, N, C = x.shape
    T = H * W
    if start < 0 or start + T > N:
        raise ValueError("feature-token window does not fit in the token sequence")
    if weight_kkc.shape != (k, k, C) or bias_c.shape != (C,):
        raise ValueError("bad weight/bias shapes")

    # Lane-dense channels: pad C to a multiple of 128 when needed (padded channels
    # carry zero weights/bias so they stay zero and are sliced off afterwards).
    # TODO(synk): keep the model width a multiple of 128 to skip this pad/slice pass.
    C_pad = _round_up(C, 128)
    if C_pad != C:
        x_in = jnp.pad(x, ((0, 0), (0, 0), (0, C_pad - C)))
        w_in = jnp.pad(weight_kkc.astype(jnp.float32).reshape(k * k, C),
                       ((0, 0), (0, C_pad - C)))
        b_in = jnp.pad(bias_c.reshape(1, C), ((0, 0), (0, C_pad - C)))
    else:
        x_in = x
        w_in = weight_kkc.astype(jnp.float32).reshape(k * k, C)
        b_in = bias_c.reshape(1, C)

    itemsize = jnp.dtype(x.dtype).itemsize

    # Channel tile: the largest lane-dense tile (<=512) dividing C_pad that keeps a
    # single (N, CT) slab around <=2 MiB.
    CT = 128
    for cand in (512, 384, 256, 128):
        if C_pad % cand == 0 and N * cand * itemsize <= (2 << 20):
            CT = cand
            break
    n_c = C_pad // CT

    # Batch tile: target ~0.5-2 MiB per input block, but keep >=2 grid steps so the
    # "parallel" axes can shard across both TensorCores on v7x.
    divisors = [d for d in range(1, B + 1) if B % d == 0]
    BT = 1
    for d in divisors:
        if d * N * CT * itemsize <= (2 << 20):
            BT = d
    while BT > 1 and (B // BT) * n_c < 2:
        BT = max(d for d in divisors if d < BT)
    n_b = B // BT

    # Explicit VMEM budget: in + out blocks, double buffered, plus slack; clamped to
    # the 32 MiB scoped limit (safe on every generation, incl. v7x's 64 MiB VMEM).
    block_bytes = BT * N * CT * itemsize
    vmem_limit = int(min(max(8 * block_bytes + (2 << 20), 16 << 20), 32 << 20))

    kernel = functools.partial(_peg_kernel, H=H, W=W, start=start, k=k)
    out = pl.pallas_call(
        kernel,
        out_shape=jax.ShapeDtypeStruct((B, N, C_pad), x.dtype),
        grid_spec=pltpu.PrefetchScalarGridSpec(
            num_scalar_prefetch=0,
            grid=(n_b, n_c),
            in_specs=[
                pl.BlockSpec((BT, N, CT), lambda b, c: (b, 0, c)),
                pl.BlockSpec((k * k, CT), lambda b, c: (0, c)),
                pl.BlockSpec((1, CT), lambda b, c: (0, c)),
            ],
            out_specs=pl.BlockSpec((BT, N, CT), lambda b, c: (b, 0, c)),
        ),
        compiler_params=pltpu.CompilerParams(
            dimension_semantics=("parallel", "parallel"),
            vmem_limit_bytes=vmem_limit),
        # Result written in place over x's buffer (no second HBM allocation / pass
        # when the caller lets XLA alias it; every output element is written).
        input_output_aliases={0: 0},
    )(x_in, w_in, b_in)

    return out[..., :C] if C_pad != C else out


def peg_forward(x, H, W, cls_pos, other_pos, weight_kkc, bias_c, *, k=3):
    """x: (B, N, C) tokens -> (B, N, C) with PEG applied to tokens at other_pos."""
    del cls_pos  # cls tokens keep their original values (reference write-back is a no-op)
    T = H * W

    # Fast path: other_pos is a (concrete) contiguous, row-major token range -> run
    # the kernel in place over the full token tensor (no gather/scatter/concat).
    start = None
    try:
        op = np.asarray(other_pos)
        if (op.ndim == 1 and op.size == T
                and np.array_equal(op, np.arange(int(op[0]), int(op[0]) + T))):
            start = int(op[0])
    except Exception:
        start = None

    if start is not None:
        return peg_tokens(x, weight_kkc, bias_c, H=H, W=W, start=start, k=k)

    # Fallback: arbitrary feature positions -> gather, convolve (start=0), scatter back.
    feat = x[:, other_pos, :]
    feat = peg_tokens(feat, weight_kkc, bias_c, H=H, W=W, start=0, k=k)
    return x.at[:, other_pos, :].set(feat)


def _reference_forward(x, H, W, cls_pos, other_pos, weight_kkc, bias_c, k=3):
    """Pure-JAX reference (lax depthwise conv, f32 HIGHEST precision)."""
    B, N, C = x.shape
    feat = x[:, other_pos, :].reshape(B, H, W, C).astype(jnp.float32)
    kern = weight_kkc.reshape(k, k, 1, C).astype(jnp.float32)
    conv = jax.lax.conv_general_dilated(
        feat, kern, window_strides=(1, 1), padding="SAME",
        dimension_numbers=("NHWC", "HWIO", "NHWC"),
        feature_group_count=C, precision=jax.lax.Precision.HIGHEST)
    feat_out = (conv + bias_c.astype(jnp.float32)[None, None, None, :] + feat)
    feat_out = feat_out.astype(x.dtype).reshape(B, H * W, C)
    return x.at[:, other_pos, :].set(feat_out)


if __name__ == "__main__":
    def _run_case(seed, B, C, H, W, k=3, dtype=jnp.float32):
        key = jax.random.PRNGKey(seed)
        kx, kw, kb = jax.random.split(key, 3)
        N = H * W + 1                                  # one cls token + H*W feature tokens
        cls_pos = jnp.array([0], dtype=jnp.int32)
        other_pos = jnp.arange(1, N, dtype=jnp.int32)

        x = jax.random.normal(kx, (B, N, C), dtype=dtype)

        # trunc_normal_(std=0.02) depthwise weight (PyTorch layout (C, 1, k, k)).
        w_oikk = 0.02 * jax.random.truncated_normal(kw, -2.0, 2.0, (C, 1, k, k),
                                                    dtype=jnp.float32)
        weight_kkc = jnp.transpose(w_oikk[:, 0, :, :], (1, 2, 0)).astype(dtype)  # (k, k, C)
        bias_c = (0.05 * jax.random.normal(kb, (C,), dtype=jnp.float32)).astype(dtype)

        ref = _reference_forward(x, H, W, cls_pos, other_pos, weight_kkc, bias_c, k=k)
        out = peg_forward(x, H, W, cls_pos, other_pos, weight_kkc, bias_c, k=k)
        out = jax.block_until_ready(out)

        assert out.shape == ref.shape and out.dtype == ref.dtype
        err = jnp.max(jnp.abs(out.astype(jnp.float32) - ref.astype(jnp.float32)))
        assert float(err) < 2e-5, f"mismatch (B={B}, C={C}): max abs err {float(err)}"

    _run_case(0, B=2, C=32, H=8, W=8)     # ragged width  -> padded-to-128 lane-dense path
    _run_case(1, B=2, C=128, H=8, W=8)    # 128-wide      -> in-place aliased path
    print("KERNEL_OK")
</pallas_src>

<mosaic_0001>
module attributes {stable_mosaic.version = 11 : i64} {
  func.func @_peg_kernel(%arg0: i32, %arg1: i32, %arg2: memref<1x65x128xf32, #tpu.memory_space<vmem>>, %arg3: memref<9x128xf32, #tpu.memory_space<vmem>>, %arg4: memref<1x128xf32, #tpu.memory_space<vmem>>, %arg5: memref<1x65x128xf32, #tpu.memory_space<vmem>>) attributes {dimension_semantics = [#tpu.dimension_semantics<parallel>, #tpu.dimension_semantics<parallel>], iteration_bounds = array<i64: 2, 1>, scalar_prefetch = 0 : i64, scratch_operands = 0 : i64, tpu.core_type = #tpu.core_type<tc>, window_params = [{transform_indices = @transform_0, window_bounds = array<i64: 1, 65, 128>}, {transform_indices = @transform_1, window_bounds = array<i64: 9, 128>}, {transform_indices = @transform_2, window_bounds = array<i64: 1, 128>}, {transform_indices = @transform_3, window_bounds = array<i64: 1, 65, 128>}]} {
    %c0 = arith.constant 0 : index
    %c0_0 = arith.constant 0 : index
    %c0_1 = arith.constant 0 : index
    %0 = vector.load %arg2[%c0, %c0_0, %c0_1] : memref<1x65x128xf32, #tpu.memory_space<vmem>>, vector<1x1x128xf32>
    %c0_2 = arith.constant 0 : index
    %c0_3 = arith.constant 0 : index
    %c0_4 = arith.constant 0 : index
    %1 = vector.load %arg5[%c0_2, %c0_3, %c0_4] : memref<1x65x128xf32, #tpu.memory_space<vmem>>, vector<1x1x128xf32>
    tpu.vector_store %arg5[%c0_2, %c0_3, %c0_4], %0 {strides = array<i32>} : memref<1x65x128xf32, #tpu.memory_space<vmem>>, vector<1x1x128xf32>,
    %c0_5 = arith.constant 0 : index
    %c0_6 = arith.constant 0 : index
    %2 = vector.load %arg4[%c0_5, %c0_6] : memref<1x128xf32, #tpu.memory_space<vmem>>, vector<1x128xf32>
    %3 = vector.shape_cast %2 : vector<1x128xf32> to vector<1x1x128xf32>
    %c0_7 = arith.constant 0 : index
    %c1 = arith.constant 1 : index
    %c0_8 = arith.constant 0 : index
    %4 = vector.load %arg2[%c0_7, %c1, %c0_8] : memref<1x65x128xf32, #tpu.memory_space<vmem>>, vector<1x64x128xf32>
    %5 = vector.broadcast %3 : vector<1x1x128xf32> to vector<1x64x128xf32>
    %6 = arith.addf %4, %5 : vector<1x64x128xf32>
    %7 = tpu.iota {dimensions = array<i32: 1>} : vector<1x64x1xi32>
    %c8_i32 = arith.constant 8 : i32
    %c0_i32 = arith.constant 0 : i32
    %8 = arith.cmpi eq, %c8_i32, %c0_i32 : i32
    %c1_i32 = arith.constant 1 : i32
    %9 = arith.select %8, %c1_i32, %c8_i32 : i32
    %10 = vector.broadcast %9 : i32 to vector<1x64x1xi32>
    %11 = arith.remsi %7, %10 : vector<1x64x1xi32>
    %c0_i32_9 = arith.constant 0 : i32
    %12 = vector.broadcast %c0_i32_9 : i32 to vector<1x64x1xi32>
    %13 = arith.cmpi ne, %11, %12 : vector<1x64x1xi32>
    %c0_i32_10 = arith.constant 0 : i32
    %14 = vector.broadcast %c0_i32_10 : i32 to vector<1x64x1xi32>
    %15 = arith.cmpi slt, %11, %14 : vector<1x64x1xi32>
    %c0_i32_11 = arith.constant 0 : i32
    %16 = arith.cmpi slt, %9, %c0_i32_11 : i32
    %17 = vector.broadcast %16 : i1 to vector<1x64x1xi1>
    %18 = vector.broadcast %17 : vector<1x64x1xi1> to vector<1x64x1xi1>
    %19 = arith.xori %15, %18 : vector<1x64x1xi1>
    %20 = arith.andi %19, %13 : vector<1x64x1xi1>
    %21 = vector.broadcast %9 : i32 to vector<1x64x1xi32>
    %22 = arith.addi %11, %21 : vector<1x64x1xi32>
    %23 = arith.select %20, %22, %11 : vector<1x64x1xi1>, vector<1x64x1xi32>
    %c0_12 = arith.constant 0 : index
    %c0_13 = arith.constant 0 : index
    %24 = vector.load %arg3[%c0_12, %c0_13] : memref<9x128xf32, #tpu.memory_space<vmem>>, vector<1x128xf32>
    %c0_14 = arith.constant 0 : index
    %c0_15 = arith.constant 0 : index
    %c0_16 = arith.constant 0 : index
    %25 = vector.load %arg2[%c0_14, %c0_15, %c0_16] : memref<1x65x128xf32, #tpu.memory_space<vmem>>, vector<1x56x128xf32>
    %26 = vector.shape_cast %24 : vector<1x128xf32> to vector<1x1x128xf32>
    %27 = vector.broadcast %26 : vector<1x1x128xf32> to vector<1x56x128xf32>
    %28 = arith.mulf %25, %27 : vector<1x56x128xf32>
    %29 = vector.extract_strided_slice %23 {offsets = [0, 8, 0], sizes = [1, 56, 1], strides = [1, 1, 1]} : vector<1x64x1xi32> to vector<1x56x1xi32>
    %c1_i32_17 = arith.constant 1 : i32
    %30 = vector.broadcast %c1_i32_17 : i32 to vector<1x56x1xi32>
    %31 = arith.cmpi sge, %29, %30 : vector<1x56x1xi32>
    %c8_i32_18 = arith.constant 8 : i32
    %32 = vector.broadcast %c8_i32_18 : i32 to vector<1x56x1xi32>
    %33 = arith.cmpi sle, %29, %32 : vector<1x56x1xi32>
    %34 = arith.andi %31, %33 : vector<1x56x1xi1>
    %c0_i32_19 = arith.constant 0 : i32
    %35 = arith.sitofp %c0_i32_19 : i32 to f32
    %36 = vector.shape_cast %34 : vector<1x56x1xi1> to vector<1x56x1xi1>
    %37 = vector.broadcast %36 : vector<1x56x1xi1> to vector<1x56x128xi1>
    %38 = vector.broadcast %35 : f32 to vector<1x56x128xf32>
    %39 = arith.select %37, %28, %38 : vector<1x56x128xi1>, vector<1x56x128xf32>
    %cst = arith.constant 0.000000e+00 : f32
    %40 = vector.broadcast %cst : f32 to vector<1x8x128xf32>
    %41 = tpu.concatenate %40, %39 in 1 : vector<1x8x128xf32>, vector<1x56x128xf32> -> vector<1x64x128xf32>
    %42 = arith.addf %6, %41 : vector<1x64x128xf32>
    %c1_20 = arith.constant 1 : index
    %c0_21 = arith.constant 0 : index
    %43 = vector.load %arg3[%c1_20, %c0_21] : memref<9x128xf32, #tpu.memory_space<vmem>>, vector<1x128xf32>
    %c0_22 = arith.constant 0 : index
    %c1_23 = arith.constant 1 : index
    %c0_24 = arith.constant 0 : index
    %44 = vector.load %arg2[%c0_22, %c1_23, %c0_24] : memref<1x65x128xf32, #tpu.memory_space<vmem>>, vector<1x56x128xf32>
    %45 = vector.shape_cast %43 : vector<1x128xf32> to vector<1x1x128xf32>
    %46 = vector.broadcast %45 : vector<1x1x128xf32> to vector<1x56x128xf32>
    %47 = arith.mulf %44, %46 : vector<1x56x128xf32>
    %cst_25 = arith.constant 0.000000e+00 : f32
    %48 = vector.broadcast %cst_25 : f32 to vector<1x8x128xf32>
    %49 = tpu.concatenate %48, %47 in 1 : vector<1x8x128xf32>, vector<1x56x128xf32> -> vector<1x64x128xf32>
    %50 = arith.addf %42, %49 : vector<1x64x128xf32>
    %c2 = arith.constant 2 : index
    %c0_26 = arith.constant 0 : index
    %51 = vector.load %arg3[%c2, %c0_26] : memref<9x128xf32, #tpu.memory_space<vmem>>, vector<1x128xf32>
    %c0_27 = arith.constant 0 : index
    %c2_28 = arith.constant 2 : index
    %c0_29 = arith.constant 0 : index
    %52 = vector.load %arg2[%c0_27, %c2_28, %c0_29] : memref<1x65x128xf32, #tpu.memory_space<vmem>>, vector<1x56x128xf32>
    %53 = vector.shape_cast %51 : vector<1x128xf32> to vector<1x1x128xf32>
    %54 = vector.broadcast %53 : vector<1x1x128xf32> to vector<1x56x128xf32>
    %55 = arith.mulf %52, %54 : vector<1x56x128xf32>
    %56 = vector.extract_strided_slice %23 {offsets = [0, 8, 0], sizes = [1, 56, 1], strides = [1, 1, 1]} : vector<1x64x1xi32> to vector<1x56x1xi32>
    %c-1_i32 = arith.constant -1 : i32
    %57 = vector.broadcast %c-1_i32 : i32 to vector<1x56x1xi32>
    %58 = arith.cmpi sge, %56, %57 : vector<1x56x1xi32>
    %c6_i32 = arith.constant 6 : i32
    %59 = vector.broadcast %c6_i32 : i32 to vector<1x56x1xi32>
    %60 = arith.cmpi sle, %56, %59 : vector<1x56x1xi32>
    %61 = arith.andi %58, %60 : vector<1x56x1xi1>
    %c0_i32_30 = arith.constant 0 : i32
    %62 = arith.sitofp %c0_i32_30 : i32 to f32
    %63 = vector.shape_cast %61 : vector<1x56x1xi1> to vector<1x56x1xi1>
    %64 = vector.broadcast %63 : vector<1x56x1xi1> to vector<1x56x128xi1>
    %65 = vector.broadcast %62 : f32 to vector<1x56x128xf32>
    %66 = arith.select %64, %55, %65 : vector<1x56x128xi1>, vector<1x56x128xf32>
    %cst_31 = arith.constant 0.000000e+00 : f32
    %67 = vector.broadcast %cst_31 : f32 to vector<1x8x128xf32>
    %68 = tpu.concatenate %67, %66 in 1 : vector<1x8x128xf32>, vector<1x56x128xf32> -> vector<1x64x128xf32>
    %69 = arith.addf %50, %68 : vector<1x64x128xf32>
    %c3 = arith.constant 3 : index
    %c0_32 = arith.constant 0 : index
    %70 = vector.load %arg3[%c3, %c0_32] : memref<9x128xf32, #tpu.memory_space<vmem>>, vector<1x128xf32>
    %c0_33 = arith.constant 0 : index
    %c0_34 = arith.constant 0 : index
    %c0_35 = arith.constant 0 : index
    %71 = vector.load %arg2[%c0_33, %c0_34, %c0_35] : memref<1x65x128xf32, #tpu.memory_space<vmem>>, vector<1x64x128xf32>
    %72 = vector.shape_cast %70 : vector<1x128xf32> to vector<1x1x128xf32>
    %73 = vector.broadcast %72 : vector<1x1x128xf32> to vector<1x64x128xf32>
    %74 = arith.mulf %71, %73 : vector<1x64x128xf32>
    %c1_i32_36 = arith.constant 1 : i32
    %75 = vector.broadcast %c1_i32_36 : i32 to vector<1x64x1xi32>
    %76 = arith.cmpi sge, %23, %75 : vector<1x64x1xi32>
    %c8_i32_37 = arith.constant 8 : i32
    %77 = vector.broadcast %c8_i32_37 : i32 to vector<1x64x1xi32>
    %78 = arith.cmpi sle, %23, %77 : vector<1x64x1xi32>
    %79 = arith.andi %76, %78 : vector<1x64x1xi1>
    %c0_i32_38 = arith.constant 0 : i32
    %80 = arith.sitofp %c0_i32_38 : i32 to f32
    %81 = vector.shape_cast %79 : vector<1x64x1xi1> to vector<1x64x1xi1>
    %82 = vector.broadcast %81 : vector<1x64x1xi1> to vector<1x64x128xi1>
    %83 = vector.broadcast %80 : f32 to vector<1x64x128xf32>
    %84 = arith.select %82, %74, %83 : vector<1x64x128xi1>, vector<1x64x128xf32>
    %85 = arith.addf %69, %84 : vector<1x64x128xf32>
    %c4 = arith.constant 4 : index
    %c0_39 = arith.constant 0 : index
    %86 = vector.load %arg3[%c4, %c0_39] : memref<9x128xf32, #tpu.memory_space<vmem>>, vector<1x128xf32>
    %c0_40 = arith.constant 0 : index
    %c1_41 = arith.constant 1 : index
    %c0_42 = arith.constant 0 : index
    %87 = vector.load %arg2[%c0_40, %c1_41, %c0_42] : memref<1x65x128xf32, #tpu.memory_space<vmem>>, vector<1x64x128xf32>
    %88 = vector.shape_cast %86 : vector<1x128xf32> to vector<1x1x128xf32>
    %89 = vector.broadcast %88 : vector<1x1x128xf32> to vector<1x64x128xf32>
    %90 = arith.mulf %87, %89 : vector<1x64x128xf32>
    %91 = arith.addf %85, %90 : vector<1x64x128xf32>
    %c5 = arith.constant 5 : index
    %c0_43 = arith.constant 0 : index
    %92 = vector.load %arg3[%c5, %c0_43] : memref<9x128xf32, #tpu.memory_space<vmem>>, vector<1x128xf32>
    %c0_44 = arith.constant 0 : index
    %c2_45 = arith.constant 2 : index
    %c0_46 = arith.constant 0 : index
    %93 = vector.load %arg2[%c0_44, %c2_45, %c0_46] : memref<1x65x128xf32, #tpu.memory_space<vmem>>, vector<1x63x128xf32>
    %94 = vector.shape_cast %92 : vector<1x128xf32> to vector<1x1x128xf32>
    %95 = vector.broadcast %94 : vector<1x1x128xf32> to vector<1x63x128xf32>
    %96 = arith.mulf %93, %95 : vector<1x63x128xf32>
    %97 = vector.extract_strided_slice %23 {offsets = [0, 0, 0], sizes = [1, 63, 1], strides = [1, 1, 1]} : vector<1x64x1xi32> to vector<1x63x1xi32>
    %c-1_i32_47 = arith.constant -1 : i32
    %98 = vector.broadcast %c-1_i32_47 : i32 to vector<1x63x1xi32>
    %99 = arith.cmpi sge, %97, %98 : vector<1x63x1xi32>
    %c6_i32_48 = arith.constant 6 : i32
    %100 = vector.broadcast %c6_i32_48 : i32 to vector<1x63x1xi32>
    %101 = arith.cmpi sle, %97, %100 : vector<1x63x1xi32>
    %102 = arith.andi %99, %101 : vector<1x63x1xi1>
    %c0_i32_49 = arith.constant 0 : i32
    %103 = arith.sitofp %c0_i32_49 : i32 to f32
    %104 = vector.shape_cast %102 : vector<1x63x1xi1> to vector<1x63x1xi1>
    %105 = vector.broadcast %104 : vector<1x63x1xi1> to vector<1x63x128xi1>
    %106 = vector.broadcast %103 : f32 to vector<1x63x128xf32>
    %107 = arith.select %105, %96, %106 : vector<1x63x128xi1>, vector<1x63x128xf32>
    %cst_50 = arith.constant 0.000000e+00 : f32
    %108 = vector.broadcast %cst_50 : f32 to vector<1x1x128xf32>
    %109 = tpu.concatenate %107, %108 in 1 : vector<1x63x128xf32>, vector<1x1x128xf32> -> vector<1x64x128xf32>
    %110 = arith.addf %91, %109 : vector<1x64x128xf32>
    %c6 = arith.constant 6 : index
    %c0_51 = arith.constant 0 : index
    %111 = vector.load %arg3[%c6, %c0_51] : memref<9x128xf32, #tpu.memory_space<vmem>>, vector<1x128xf32>
    %c0_52 = arith.constant 0 : index
    %c8 = arith.constant 8 : index
    %c0_53 = arith.constant 0 : index
    %112 = vector.load %arg2[%c0_52, %c8, %c0_53] : memref<1x65x128xf32, #tpu.memory_space<vmem>>, vector<1x56x128xf32>
    %113 = vector.shape_cast %111 : vector<1x128xf32> to vector<1x1x128xf32>
    %114 = vector.broadcast %113 : vector<1x1x128xf32> to vector<1x56x128xf32>
    %115 = arith.mulf %112, %114 : vector<1x56x128xf32>
    %116 = vector.extract_strided_slice %23 {offsets = [0, 0, 0], sizes = [1, 56, 1], strides = [1, 1, 1]} : vector<1x64x1xi32> to vector<1x56x1xi32>
    %c1_i32_54 = arith.constant 1 : i32
    %117 = vector.broadcast %c1_i32_54 : i32 to vector<1x56x1xi32>
    %118 = arith.cmpi sge, %116, %117 : vector<1x56x1xi32>
    %c8_i32_55 = arith.constant 8 : i32
    %119 = vector.broadcast %c8_i32_55 : i32 to vector<1x56x1xi32>
    %120 = arith.cmpi sle, %116, %119 : vector<1x56x1xi32>
    %121 = arith.andi %118, %120 : vector<1x56x1xi1>
    %c0_i32_56 = arith.constant 0 : i32
    %122 = arith.sitofp %c0_i32_56 : i32 to f32
    %123 = vector.shape_cast %121 : vector<1x56x1xi1> to vector<1x56x1xi1>
    %124 = vector.broadcast %123 : vector<1x56x1xi1> to vector<1x56x128xi1>
    %125 = vector.broadcast %122 : f32 to vector<1x56x128xf32>
    %126 = arith.select %124, %115, %125 : vector<1x56x128xi1>, vector<1x56x128xf32>
    %cst_57 = arith.constant 0.000000e+00 : f32
    %127 = vector.broadcast %cst_57 : f32 to vector<1x8x128xf32>
    %128 = tpu.concatenate %126, %127 in 1 : vector<1x56x128xf32>, vector<1x8x128xf32> -> vector<1x64x128xf32>
    %129 = arith.addf %110, %128 : vector<1x64x128xf32>
    %c7 = arith.constant 7 : index
    %c0_58 = arith.constant 0 : index
    %130 = vector.load %arg3[%c7, %c0_58] : memref<9x128xf32, #tpu.memory_space<vmem>>, vector<1x128xf32>
    %c0_59 = arith.constant 0 : index
    %c9 = arith.constant 9 : index
    %c0_60 = arith.constant 0 : index
    %131 = vector.load %arg2[%c0_59, %c9, %c0_60] : memref<1x65x128xf32, #tpu.memory_space<vmem>>, vector<1x56x128xf32>
    %132 = vector.shape_cast %130 : vector<1x128xf32> to vector<1x1x128xf32>
    %133 = vector.broadcast %132 : vector<1x1x128xf32> to vector<1x56x128xf32>
    %134 = arith.mulf %131, %133 : vector<1x56x128xf32>
    %cst_61 = arith.constant 0.000000e+00 : f32
    %135 = vector.broadcast %cst_61 : f32 to vector<1x8x128xf32>
    %136 = tpu.concatenate %134, %135 in 1 : vector<1x56x128xf32>, vector<1x8x128xf32> -> vector<1x64x128xf32>
    %137 = arith.addf %129, %136 : vector<1x64x128xf32>
    %c8_62 = arith.constant 8 : index
    %c0_63 = arith.constant 0 : index
    %138 = vector.load %arg3[%c8_62, %c0_63] : memref<9x128xf32, #tpu.memory_space<vmem>>, vector<1x128xf32>
    %c0_64 = arith.constant 0 : index
    %c10 = arith.constant 10 : index
    %c0_65 = arith.constant 0 : index
    %139 = vector.load %arg2[%c0_64, %c10, %c0_65] : memref<1x65x128xf32, #tpu.memory_space<vmem>>, vector<1x55x128xf32>
    %140 = vector.shape_cast %138 : vector<1x128xf32> to vector<1x1x128xf32>
    %141 = vector.broadcast %140 : vector<1x1x128xf32> to vector<1x55x128xf32>
    %142 = arith.mulf %139, %141 : vector<1x55x128xf32>
    %143 = vector.extract_strided_slice %23 {offsets = [0, 0, 0], sizes = [1, 55, 1], strides = [1, 1, 1]} : vector<1x64x1xi32> to vector<1x55x1xi32>
    %c-1_i32_66 = arith.constant -1 : i32
    %144 = vector.broadcast %c-1_i32_66 : i32 to vector<1x55x1xi32>
    %145 = arith.cmpi sge, %143, %144 : vector<1x55x1xi32>
    %c6_i32_67 = arith.constant 6 : i32
    %146 = vector.broadcast %c6_i32_67 : i32 to vector<1x55x1xi32>
    %147 = arith.cmpi sle, %143, %146 : vector<1x55x1xi32>
    %148 = arith.andi %145, %147 : vector<1x55x1xi1>
    %c0_i32_68 = arith.constant 0 : i32
    %149 = arith.sitofp %c0_i32_68 : i32 to f32
    %150 = vector.shape_cast %148 : vector<1x55x1xi1> to vector<1x55x1xi1>
    %151 = vector.broadcast %150 : vector<1x55x1xi1> to vector<1x55x128xi1>
    %152 = vector.broadcast %149 : f32 to vector<1x55x128xf32>
    %153 = arith.select %151, %142, %152 : vector<1x55x128xi1>, vector<1x55x128xf32>
    %cst_69 = arith.constant 0.000000e+00 : f32
    %154 = vector.broadcast %cst_69 : f32 to vector<1x9x128xf32>
    %155 = tpu.concatenate %153, %154 in 1 : vector<1x55x128xf32>, vector<1x9x128xf32> -> vector<1x64x128xf32>
    %156 = arith.addf %137, %155 : vector<1x64x128xf32>
    %c0_70 = arith.constant 0 : index
    %c1_71 = arith.constant 1 : index
    %c0_72 = arith.constant 0 : index
    %157 = vector.load %arg5[%c0_70, %c1_71, %c0_72] : memref<1x65x128xf32, #tpu.memory_space<vmem>>, vector<1x64x128xf32>
    tpu.vector_store %arg5[%c0_70, %c1_71, %c0_72], %156 {strides = array<i32>} : memref<1x65x128xf32, #tpu.memory_space<vmem>>, vector<1x64x128xf32>,
    return
  }
  func.func @transform_0(%arg0: i32, %arg1: i32) -> (i32, i32, i32) {
    %c0_i32 = arith.constant 0 : i32
    %c0_i32_0 = arith.constant 0 : i32
    return %arg0, %c0_i32, %arg1 : i32, i32, i32
  }
  func.func @transform_1(%arg0: i32, %arg1: i32) -> (i32, i32) {
    %c0_i32 = arith.constant 0 : i32
    %c0_i32_0 = arith.constant 0 : i32
    return %c0_i32, %arg1 : i32, i32
  }
  func.func @transform_2(%arg0: i32, %arg1: i32) -> (i32, i32) {
    %c0_i32 = arith.constant 0 : i32
    %c0_i32_0 = arith.constant 0 : i32
    return %c0_i32, %arg1 : i32, i32
  }
  func.func @transform_3(%arg0: i32, %arg1: i32) -> (i32, i32, i32) {
    %c0_i32 = arith.constant 0 : i32
    %c0_i32_0 = arith.constant 0 : i32
    return %arg0, %c0_i32, %arg1 : i32, i32, i32
  }
}

</mosaic_0001>

<bundles_post_ra>
// kernel: tpu_custom_call.1
= control target key start
LH: loop header
LB: loop body
LE: loop exit
PB: predicated region body
PF: predicated region fallthrough
CT: control target
= control target key end

     0   :  { %s882_s12 = smov 0   ;;  %s884_s13 = smov 0   ;;  %s1285_s0 = inlined_call_operand.vmem [shape: f32[2,65,128], index: 0, kind: input, shape index: {}, may-alias: {0,3}]   ;;  %s1286_s1 = inlined_call_operand.vmem [shape: f32[9,128], index: 1, kind: input, shape index: {}]   ;;  %s1287_s2 = inlined_call_operand.vmem [shape: f32[1,128], index: 2, kind: input, shape index: {}]   ;;  %s1288_s3 = inlined_call_operand.vmem [shape: f32[2,65,128], index: 3, kind: output, shape index: {}, may-alias: {0,3}]  }
   0x1   :  { %s886_s14 = smov 0  }
   0x2 LB: > { %s25_s15 = sadd.s32 1, %s856_s13  ;;  %p798_p0 = scmp.ge.s32.totalorder %s860_s14, 1  ;;  %s860_s14 = sphi %s886_s14, %s13_s14   ;;  %s856_s13 = sphi %s884_s13, %s1343_s13   ;;  %s852_s12 = sphi %s882_s12, %s1342_s12  }
   0x3   : > { %p27_p1 = scmp.ge.s32.totalorder %s25_s15, 2  ;;  %p173_p2 = scmp.lt.s32.totalorder %s860_s14, 3 }
   0x5   : > { %s1345_s15 = smov (%p27_p1, %s25_s15), 0  ;;  %p174_p3 = pnand %p798_p0, %p173_p2 }
   0x7   : > { %177 = sbr.rel (%p174_p3) target bundleno = 80 (0x50), region = 32 }
   0xc   : > { %p210_p4 = scmp.lt.s32.totalorder %s852_s12, 1  ;;  %v255_v0 = vlaneseq  ;;  %v828_v10 = vld [vmem:[%s1287_s2] ss:$0 sm:$0xff]  ;;  %v927_v18 = vld [vmem:[%s1286_s1 + $0x1] ss:$0 sm:$0xff]  ;;  %v1300_v22 = vmov 0 }
   0xd   : > { %v829_v20 = vld [vmem:[%s1286_s1] ss:$0 sm:$0xff]  ;;  %v1322_v56 = vmov 0  ;;  %v837_v21 = vld [vmem:[%s1286_s1 + $0x8] ss:$0 sm:$0xff] }
   0xe   : > { %s1347_s12 = smov (!%p210_p4, %s852_s12), 1  ;;  %v900_v1 = vshrl.u32 %v255_v0, 7 }
   0xf   : > { %s803_s16 = smul.u32 72, %s1347_s12 }
  0x10   : > { %v257_v2 = vadd.s32 8, %v900_v1  ;;  %v258_v3 = vadd.s32 16, %v900_v1  ;;  %v259_v4 = vadd.s32 24, %v900_v1  ;;  %v260_v5 = vadd.s32 32, %v900_v1 }
  0x11   : > { %s905_s19 = scalar_lea.vmem %s1285_s0, %s803_s16  ;;  %s910_s22 = scalar_lea.vmem %s1288_s3, %s803_s16  ;;  %v261_v7 = vadd.s32 40, %v900_v1  ;;  %v262_v8 = vadd.s32 48, %v900_v1  ;;  %v263_v9 = vadd.s32 56, %v900_v1  ;;  %v1289_v19 = vand.u32 7, %v900_v1 }
  0x12   : > { %v233_v6 = vld [vmem:[%s905_s19] sm:$0x1]  ;;  %v275_v11 = vand.u32 7, %v257_v2  ;;  %v282_v12 = vand.u32 7, %v258_v3  ;;  %v289_v13 = vand.u32 7, %v259_v4  ;;  %v296_v14 = vand.u32 7, %v260_v5 }
  0x13   : > { %234 = vst [vmem:[%s910_s22] sm:$0x1] %v233_v6  ;;  %v303_v15 = vand.u32 7, %v261_v7  ;;  %v310_v16 = vand.u32 7, %v262_v8  ;;  %v317_v17 = vand.u32 7, %v263_v9  ;;  %v1327_v2 = vmov 0 }
  0x14   : > { %vm933_vm0 = vcmp.ge.s32.totalorder %v275_v11, 1  ;;  %vm937_vm1 = vcmp.ge.s32.totalorder %v282_v12, 1  ;;  %vm941_vm2 = vcmp.ge.s32.totalorder %v289_v13, 1  ;;  %vm945_vm3 = vcmp.ge.s32.totalorder %v296_v14, 1 }
  0x15   : > { %v1301_v22 = vsel %vm937_vm1, 4294967295, %v1300_v22  ;;  %vm958_vm4 = vcmp.ge.s32.totalorder %v303_v15, 1  ;;  %vm962_vm5 = vcmp.ge.s32.totalorder %v310_v16, 1  ;;  %vm966_vm6 = vcmp.ge.s32.totalorder %v317_v17, 1 }
  0x16   : > { %vm1000_vm7 = vcmp.le.s32.totalorder %v275_v11, 6  ;;  %vm1018_vm8 = vcmp.le.s32.totalorder %v282_v12, 6  ;;  %vm1022_vm9 = vcmp.le.s32.totalorder %v289_v13, 6  ;;  %vm1026_vm10 = vcmp.le.s32.totalorder %v296_v14, 6 }
  0x17   : > { %vm1030_vm11 = vcmp.le.s32.totalorder %v303_v15, 6  ;;  %vm1048_vm12 = vcmp.le.s32.totalorder %v310_v16, 6  ;;  %vm1052_vm13 = vcmp.le.s32.totalorder %v317_v17, 6  ;;  %v831_v15 = vld [vmem:[%s1286_s1 + $0x2] ss:$0 sm:$0xff]  ;;  %vm1087_vm14 = vcmp.ge.s32.totalorder %v1289_v19, 1 }
  0x18   : > { %v1323_v56 = vsel %vm1030_vm11, 4294967295, %v1322_v56  ;;  %v1328_v2 = vsel %vm1052_vm13, 4294967295, %v1327_v2 }
  0x19   : > { %1324 = vst [vmem:[#allocation4_spill] sm:$0xff] %v1323_v56 }
  0x1a   : > { %v950_v25 = vld [vmem:[%s905_s19 + $0x1] sm:$0xff]  ;;  %v953_v26 = vld [vmem:[%s905_s19 + $0x9] sm:$0xff]  ;;  %v956_v27 = vld [vmem:[%s905_s19 + $0x11] sm:$0xff]  ;;  %1329 = vst [vmem:[#allocation5_spill] sm:$0xff] %v1328_v2 }
  0x1b   : > { %v971_v31 = vld [vmem:[%s905_s19 + $0x19] sm:$0xff]  ;;  %v974_v32 = vld [vmem:[%s905_s19 + $0x21] sm:$0xff]  ;;  %v977_v33 = vld [vmem:[%s905_s19 + $0x29] sm:$0xff]  ;;  %v980_v34 = vadd.f32 %v828_v10, %v950_v25  ;;  %v248_v35 = vadd.f32 %v828_v10, %v953_v26  ;;  %v249_v36 = vadd.f32 %v828_v10, %v956_v27  ;;  %v435_v37 = vmul.f32 %v927_v18, %v950_v25 }
  0x1c   : > { %v987_v38 = vld [vmem:[%s905_s19 + $0x31] sm:$0xff]  ;;  %v990_v39 = vld [vmem:[%s905_s19 + $0x39] sm:$0xff]  ;;  %v250_v40 = vadd.f32 %v828_v10, %v971_v31  ;;  %v251_v41 = vadd.f32 %v828_v10, %v974_v32  ;;  %v252_v42 = vadd.f32 %v828_v10, %v977_v33  ;;  %v436_v44 = vmul.f32 %v927_v18, %v953_v26  ;;  %v1007_v48 = vld [vmem:[%s905_s19 + $0x8] sm:$0xff] }
  0x1d   : > { %1312 = vst [vmem:[#allocation2_spill] sm:$0xff] %v987_v38  ;;  %v996_v43 = vld [vmem:[%s905_s19] sm:$0xff]  ;;  %v253_v46 = vadd.f32 %v828_v10, %v987_v38  ;;  %v254_v47 = vadd.f32 %v828_v10, %v990_v39  ;;  %v1010_v49 = vld [vmem:[%s905_s19 + $0x10] sm:$0xff]  ;;  %v1013_v50 = vld [vmem:[%s905_s19 + $0x18] sm:$0xff]  ;;  %v437_v52 = vmul.f32 %v927_v18, %v956_v27  ;;  %v370_v60 = vmul.f32 %v829_v20, %v1007_v48 }
  0x1e   : > { %1313 = vst [vmem:[#allocation3_spill] sm:$0xff] %v990_v39  ;;  %v369_v51 = vmul.f32 %v829_v20, %v996_v43  ;;  %v1035_v57 = vld [vmem:[%s905_s19 + $0x20] sm:$0xff]  ;;  %v1038_v58 = vld [vmem:[%s905_s19 + $0x28] sm:$0xff]  ;;  %v1041_v59 = vld [vmem:[%s905_s19 + $0x30] sm:$0xff]  ;;  %v371_v61 = vmul.f32 %v829_v20, %v1010_v49  ;;  %v372_v62 = vmul.f32 %v829_v20, %v1013_v50  ;;  %v438_v63 = vmul.f32 %v927_v18, %v971_v31 }
  0x1f   : > { %v373_v3 = vmul.f32 %v829_v20, %v1035_v57  ;;  %v374_v4 = vmul.f32 %v829_v20, %v1038_v58  ;;  %v375_v5 = vmul.f32 %v829_v20, %v1041_v59  ;;  %v412_v7 = vsel %vm937_vm1, %v370_v60, 0.0  ;;  %v1080_v60 = vld [vmem:[%s905_s19 + $0xa] sm:$0xff] }
  0x20   : > { %v411_v6 = vsel %vm933_vm0, %v369_v51, 0.0  ;;  %v413_v8 = vsel %vm941_vm2, %v371_v61, 0.0  ;;  %v414_v9 = vsel %vm945_vm3, %v372_v62, 0.0  ;;  %v420_v14 = vadd.f32 %v412_v7, %v249_v36  ;;  %v1077_v51 = vld [vmem:[%s905_s19 + $0x2] sm:$0xff]  ;;  %v1098_v62 = vld [vmem:[%s905_s19 + $0x12] sm:$0xff] }
  0x21   : > { %v419_v10 = vadd.f32 %v411_v6, %v248_v35  ;;  %v415_v11 = vsel %vm958_vm4, %v373_v3, 0.0  ;;  %v416_v12 = vsel %vm962_vm5, %v374_v4, 0.0  ;;  %v417_v13 = vsel %vm966_vm6, %v375_v5, 0.0  ;;  %v832_v61 = vld [vmem:[%s1286_s1 + $0x3] ss:$0 sm:$0xff]  ;;  %v1101_v3 = vld [vmem:[%s905_s19 + $0x1a] sm:$0xff] }
  0x22   : > { %v421_v16 = vadd.f32 %v413_v8, %v250_v40  ;;  %v422_v17 = vadd.f32 %v414_v9, %v251_v41  ;;  %v423_v20 = vadd.f32 %v415_v11, %v252_v42  ;;  %v424_v35 = vadd.f32 %v416_v12, %v253_v46  ;;  %v1104_v4 = vld [vmem:[%s905_s19 + $0x22] sm:$0xff]  ;;  %v1110_v9 = vld [vmem:[%s905_s19 + $0x32] sm:$0xff] }
  0x23   : > { %v425_v40 = vadd.f32 %v417_v13, %v254_v47  ;;  %v439_v41 = vmul.f32 %v927_v18, %v974_v32  ;;  %v440_v42 = vmul.f32 %v927_v18, %v977_v33  ;;  %v441_v46 = vmul.f32 %v927_v18, %v987_v38  ;;  %v1107_v47 = vld [vmem:[%s905_s19 + $0x2a] sm:$0xff] }
  0x24   : > { %v443_v5 = vadd.f32 %v435_v37, %v419_v10  ;;  %v444_v6 = vadd.f32 %v436_v44, %v420_v14  ;;  %v445_v7 = vadd.f32 %v437_v52, %v421_v16  ;;  %v446_v8 = vadd.f32 %v438_v63, %v422_v17 }
  0x25   : > { %v447_v11 = vadd.f32 %v439_v41, %v423_v20  ;;  %v448_v12 = vadd.f32 %v440_v42, %v424_v35  ;;  %v449_v13 = vadd.f32 %v441_v46, %v425_v40  ;;  %v459_v19 = vmul.f32 %v831_v15, %v1077_v51  ;;  %v1135_v40 = vld [vmem:[%s905_s19 + $0x38] sm:$0xff] }
  0x26   : > { %v460_v18 = vmul.f32 %v831_v15, %v1080_v60  ;;  %v461_v39 = vmul.f32 %v831_v15, %v1098_v62  ;;  %v462_v38 = vmul.f32 %v831_v15, %v1101_v3  ;;  %v463_v37 = vmul.f32 %v831_v15, %v1104_v4 }
  0x27   : > { %v464_v44 = vmul.f32 %v831_v15, %v1107_v47  ;;  %v465_v52 = vmul.f32 %v831_v15, %v1110_v9  ;;  %v501_v63 = vsel %vm1000_vm7, %v459_v19, 0.0  ;;  %v519_v10 = vmul.f32 %v832_v61, %v996_v43 }
  0x28   : > { %v502_v14 = vsel %vm1018_vm8, %v460_v18, 0.0  ;;  %v503_v16 = vsel %vm1022_vm9, %v461_v39, 0.0  ;;  %v504_v17 = vsel %vm1026_vm10, %v462_v38, 0.0  ;;  %v505_v20 = vsel %vm1030_vm11, %v463_v37, 0.0 }
  0x29   : > { %v506_v15 = vsel %vm1048_vm12, %v464_v44, 0.0  ;;  %v507_v19 = vsel %vm1052_vm13, %v465_v52, 0.0  ;;  %v509_v35 = vadd.f32 %v501_v63, %v443_v5  ;;  %v510_v43 = vadd.f32 %v502_v14, %v444_v6 }
  0x2a   : > { %v511_v41 = vadd.f32 %v503_v16, %v445_v7  ;;  %v512_v42 = vadd.f32 %v504_v17, %v446_v8  ;;  %v513_v46 = vadd.f32 %v505_v20, %v447_v11  ;;  %v514_v39 = vadd.f32 %v506_v15, %v448_v12 }
  0x2b   : > { %v515_v18 = vadd.f32 %v507_v19, %v449_v13  ;;  %v520_v38 = vmul.f32 %v832_v61, %v1007_v48  ;;  %v521_v56 = vmul.f32 %v832_v61, %v1010_v49  ;;  %v522_v37 = vmul.f32 %v832_v61, %v1013_v50 }
  0x2c   : > { %v523_v44 = vmul.f32 %v832_v61, %v1035_v57  ;;  %v524_v2 = vmul.f32 %v832_v61, %v1038_v58  ;;  %v525_v5 = vmul.f32 %v832_v61, %v1041_v59  ;;  %v526_v6 = vmul.f32 %v832_v61, %v1135_v40 }
  0x2d   : > { %v1332_v7 = vand.u32 7, %v900_v1  ;;  %v532_v11 = vsel %vm1087_vm14, %v519_v10, 0.0  ;;  %v533_v12 = vsel %vm933_vm0, %v520_v38, 0.0  ;;  %v534_v13 = vsel %vm937_vm1, %v521_v56, 0.0  ;;  %v833_v1 = vld [vmem:[%s1286_s1 + $0x4] ss:$0 sm:$0xff] }
  0x2e   : > { %v535_v52 = vsel %vm941_vm2, %v522_v37, 0.0  ;;  %v536_v61 = vsel %vm945_vm3, %v523_v44, 0.0  ;;  %v537_v63 = vsel %vm958_vm4, %v524_v2, 0.0  ;;  %v538_v10 = vsel %vm962_vm5, %v525_v5, 0.0 }
  0x2f   : > { %vm1146_vm15 = vcmp.le.s32.totalorder %v1332_v7, 6  ;;  %v539_v14 = vsel %vm966_vm6, %v526_v6, 0.0  ;;  %vm597_vm1 = vcmask 1046528   ;;  %v540_v56 = vadd.f32 %v532_v11, %v980_v34  ;;  %v834_v34 = vld [vmem:[%s1286_s1 + $0x5] ss:$0 sm:$0xff] }
  0x30   : > { %v541_v16 = vadd.f32 %v533_v12, %v509_v35  ;;  %v542_v17 = vadd.f32 %v534_v13, %v510_v43  ;;  %v543_v20 = vadd.f32 %v535_v52, %v511_v41  ;;  %v544_v15 = vadd.f32 %v536_v61, %v512_v42  ;;  %v1335_v41 = vld [vmem:[#allocation2_spill] sm:$0xff] }
  0x31   : > { %v545_v19 = vadd.f32 %v537_v63, %v513_v46  ;;  %v546_v38 = vadd.f32 %v538_v10, %v514_v39  ;;  %v547_v37 = vadd.f32 %v539_v14, %v515_v18  ;;  %v550_v44 = vmul.f32 %v833_v1, %v950_v25  ;;  %v1336_v46 = vld [vmem:[#allocation3_spill] sm:$0xff]  ;;  %v1182_v11 = vld [vmem:[%s905_s19 + $0x3a] sm:$0x7f] }
  0x32   : > { %v551_v2 = vmul.f32 %v833_v1, %v953_v26  ;;  %v552_v5 = vmul.f32 %v833_v1, %v956_v27  ;;  %v553_v30 = vmul.f32 %v833_v1, %v971_v31  ;;  %v554_v35 = vmul.f32 %v833_v1, %v974_v32 }
  0x33   : > { %v555_v43 = vmul.f32 %v833_v1, %v977_v33  ;;  %v556_v42 = vmul.f32 %v833_v1, %v1335_v41  ;;  %v557_v39 = vmul.f32 %v833_v1, %v1336_v46  ;;  %v558_v18 = vadd.f32 %v550_v44, %v540_v56 }
  0x34   : > { %v559_v25 = vadd.f32 %v551_v2, %v541_v16  ;;  %v560_v6 = vadd.f32 %v552_v5, %v542_v17  ;;  %v561_v7 = vadd.f32 %v553_v30, %v543_v20  ;;  %v562_v12 = vadd.f32 %v554_v35, %v544_v15 }
  0x35   : > { %v563_v13 = vadd.f32 %v555_v43, %v545_v19  ;;  %v564_v52 = vadd.f32 %v556_v42, %v546_v38  ;;  %v565_v61 = vadd.f32 %v557_v39, %v547_v37  ;;  %v576_v63 = vmul.f32 %v834_v34, %v1077_v51  ;;  %v835_v38 = vld [vmem:[%s1286_s1 + $0x6] ss:$0 sm:$0xff] }
  0x36   : > { %v577_v10 = vmul.f32 %v834_v34, %v1080_v60  ;;  %v578_v14 = vmul.f32 %v834_v34, %v1098_v62  ;;  %v579_v41 = vmul.f32 %v834_v34, %v1101_v3  ;;  %v580_v1 = vmul.f32 %v834_v34, %v1104_v4 }
  0x37   : > { %v581_v56 = vmul.f32 %v834_v34, %v1107_v47  ;;  %v582_v16 = vmul.f32 %v834_v34, %v1110_v9  ;;  %v583_v17 = vmul.f32 %v834_v34, %v1182_v11  ;;  %v589_v20 = vsel %vm1146_vm15, %v576_v63, 0.0 }
  0x38   : > { %v590_v51 = vsel %vm1000_vm7, %v577_v10, 0.0  ;;  %v591_v15 = vsel %vm1018_vm8, %v578_v14, 0.0  ;;  %v592_v19 = vsel %vm1022_vm9, %v579_v41, 0.0  ;;  %v593_v37 = vsel %vm1026_vm10, %v580_v1, 0.0 }
  0x39   : > { %v594_v2 = vsel %vm1030_vm11, %v581_v56, 0.0  ;;  %v595_v5 = vsel %vm1048_vm12, %v582_v16, 0.0  ;;  %v596_v34 = vsel %vm1052_vm13, %v583_v17, 0.0  ;;  %v599_v43 = vadd.f32 %v589_v20, %v558_v18 }
  0x3a   : > { %v598_v35 = vsel %vm597_vm1, %v596_v34, 0.0  ;;  %v600_v41 = vadd.f32 %v590_v51, %v559_v25  ;;  %v601_v42 = vadd.f32 %v591_v15, %v560_v6  ;;  %v602_v39 = vadd.f32 %v592_v19, %v561_v7  ;;  %v836_v6 = vld [vmem:[%s1286_s1 + $0x7] ss:$0 sm:$0xff] }
  0x3b   : > { %v603_v63 = vadd.f32 %v593_v37, %v562_v12  ;;  %v604_v10 = vadd.f32 %v594_v2, %v563_v13  ;;  %v605_v14 = vadd.f32 %v595_v5, %v564_v52  ;;  %v606_v1 = vadd.f32 %v598_v35, %v565_v61  ;;  %v1340_v51 = vld [vmem:[#allocation2_spill] sm:$0xff] }
  0x3c   : > { %v609_v44 = vmul.f32 %v835_v38, %v1007_v48  ;;  %v610_v56 = vmul.f32 %v835_v38, %v1010_v49  ;;  %v611_v16 = vmul.f32 %v835_v38, %v1013_v50  ;;  %v612_v30 = vmul.f32 %v835_v38, %v1035_v57 }
  0x3d   : > { %v613_v17 = vmul.f32 %v835_v38, %v1038_v58  ;;  %v614_v18 = vmul.f32 %v835_v38, %v1041_v59  ;;  %v615_v25 = vmul.f32 %v835_v38, %v1135_v40  ;;  %vm1339_vm6 = vnez %v1301_v22  ;;  %680 = vst [vmem:[%s910_s22 + $0x39] sm:$0xff] %v606_v1 }
  0x3e   : > { %v616_v7 = vsel %vm1087_vm14, %v609_v44, 0.0  ;;  %v617_v48 = vsel %vm933_vm0, %v610_v56, 0.0  ;;  %v618_v49 = vsel %vm1339_vm6, %v611_v16, 0.0  ;;  %v619_v50 = vsel %vm941_vm2, %v612_v30, 0.0 }
  0x3f   : > { %v620_v57 = vsel %vm945_vm3, %v613_v17, 0.0  ;;  %v621_v58 = vsel %vm958_vm4, %v614_v18, 0.0  ;;  %v622_v59 = vsel %vm962_vm5, %v615_v25, 0.0  ;;  %v623_v36 = vadd.f32 %v616_v7, %v599_v43 }
  0x40   : > { %v624_v22 = vadd.f32 %v617_v48, %v600_v41  ;;  %v625_v40 = vadd.f32 %v618_v49, %v601_v42  ;;  %v626_v12 = vadd.f32 %v619_v50, %v602_v39  ;;  %v627_v13 = vadd.f32 %v620_v57, %v603_v63 }
  0x41   : > { %v628_v23 = vadd.f32 %v621_v58, %v604_v10  ;;  %v629_v52 = vadd.f32 %v622_v59, %v605_v14  ;;  %v633_v24 = vmul.f32 %v836_v6, %v953_v26  ;;  %v634_v61 = vmul.f32 %v836_v6, %v956_v27 }
  0x42   : > { %v635_v28 = vmul.f32 %v836_v6, %v971_v31  ;;  %v636_v29 = vmul.f32 %v836_v6, %v974_v32  ;;  %v637_v20 = vmul.f32 %v836_v6, %v977_v33  ;;  %v638_v15 = vmul.f32 %v836_v6, %v1340_v51 }
  0x43   : > { %v639_v19 = vmul.f32 %v836_v6, %v1336_v46  ;;  %v640_v38 = vadd.f32 %v633_v24, %v623_v36  ;;  %v650_v37 = vmul.f32 %v837_v21, %v1080_v60  ;;  %v641_v44 = vadd.f32 %v634_v61, %v624_v22 }
  0x44   : > { %v642_v2 = vadd.f32 %v635_v28, %v625_v40  ;;  %v643_v5 = vadd.f32 %v636_v29, %v626_v12  ;;  %v644_v34 = vadd.f32 %v637_v20, %v627_v13  ;;  %v645_v26 = vadd.f32 %v638_v15, %v628_v23 }
  0x45   : > { %v651_v27 = vmul.f32 %v837_v21, %v1098_v62  ;;  %v652_v31 = vmul.f32 %v837_v21, %v1101_v3  ;;  %v653_v32 = vmul.f32 %v837_v21, %v1104_v4  ;;  %v654_v33 = vmul.f32 %v837_v21, %v1107_v47 }
  0x46   : > { %v655_v35 = vmul.f32 %v837_v21, %v1110_v9  ;;  %v656_v46 = vmul.f32 %v837_v21, %v1182_v11  ;;  %v657_v60 = vsel %vm1146_vm15, %v650_v37, 0.0  ;;  %v646_v43 = vadd.f32 %v639_v19, %v629_v52 }
  0x47   : > { %v658_v41 = vsel %vm1000_vm7, %v651_v27, 0.0  ;;  %v659_v62 = vsel %vm1018_vm8, %v652_v31, 0.0  ;;  %v665_v3 = vadd.f32 %v657_v60, %v640_v38  ;;  %v660_v4 = vsel %vm1022_vm9, %v653_v32, 0.0 }
  0x48   : > { %v661_v47 = vsel %vm1026_vm10, %v654_v33, 0.0  ;;  %v663_v9 = vsel %vm1048_vm12, %v656_v46, 0.0  ;;  %v666_v45 = vadd.f32 %v658_v41, %v641_v44  ;;  %v662_v53 = vsel %vm1030_vm11, %v655_v35, 0.0 }
  0x49   : > { %v667_v11 = vadd.f32 %v659_v62, %v642_v2  ;;  %v668_v42 = vadd.f32 %v660_v4, %v643_v5  ;;  %v669_v39 = vadd.f32 %v661_v47, %v644_v34  ;;  %673 = vst [vmem:[%s910_s22 + $0x1] sm:$0xff] %v665_v3  ;;  %v664_v54 = vsel %vm597_vm1, %v663_v9, 0.0 }
  0x4a   : > { %v670_v63 = vadd.f32 %v662_v53, %v645_v26  ;;  %674 = vst [vmem:[%s910_s22 + $0x9] sm:$0xff] %v666_v45  ;;  %v671_v10 = vadd.f32 %v664_v54, %v646_v43 }
  0x4b   : > { %675 = vst [vmem:[%s910_s22 + $0x11] sm:$0xff] %v667_v11 }
  0x4c   : > { %676 = vst [vmem:[%s910_s22 + $0x19] sm:$0xff] %v668_v42 }
  0x4d   : > { %677 = vst [vmem:[%s910_s22 + $0x21] sm:$0xff] %v669_v39 }
  0x4e   : > { %678 = vst [vmem:[%s910_s22 + $0x29] sm:$0xff] %v670_v63 }
  0x4f   : > { %679 = vst [vmem:[%s910_s22 + $0x31] sm:$0xff] %v671_v10 }
  0x50 PF: > { %s13_s14 = sadd.s32 1, %s860_s14   ;;  %s1342_s12 = smov %s856_s13 }
  0x51   : > { %p10_p5 = scmp.ge.s32.totalorder %s13_s14, 4   ;;  %s1343_s13 = smov %s1345_s15 }
  0x53   :  { %12 = sbr.rel (!%p10_p5) target bundleno = 2 (0x2), region = 68 }

</bundles_post_ra>
